<compile_context>
chip_gen: v7x
topology: tpu7x:2x2x1
jax: 0.10.0
libtpu: 0.0.40
codegen_flags: <defaults>
</compile_context>

<pallas_src>
import jax
import jax.numpy as jnp
from jax.experimental import pallas as pl
from jax.experimental.pallas import tpu as pltpu

D_TITLE = 400   # pretrained news-title embedding dim (fixed by the module)
EMB_DIM = 128   # args.embedding_dim


def _round_up(x, m):
    return (x + m - 1) // m * m


def baseline_kernel(clicked_ref, cand_ref,
                    wu1_ref, bu1_ref, wu2_ref, bu2_ref,
                    wn1_ref, bn1_ref, wn2_ref, bn2_ref,
                    score_ref):
    """One row-tile of TB users.

    clicked_ref: [H, TB, 400]  bf16  history-major clicked embeddings
    cand_ref   : [C, TB, 400]  bf16  candidate-major candidate embeddings
    score_ref  : [C, TB]       f32   lane-dense scores (transposed in wrapper)
    """
    H, TB, D = clicked_ref.shape
    C = cand_ref.shape[0]

    # ---- user tower: pooled once per user (leading-axis reduce = VPU adds) ----
    # Sum over H accumulated in f32; the /10 is folded into wu1 at prep time.
    pooled = jnp.sum(clicked_ref[...].astype(jnp.float32), axis=0)       # [TB, 400]
    u = jnp.dot(pooled.astype(jnp.bfloat16), wu1_ref[...],
                preferred_element_type=jnp.float32) + bu1_ref[...]
    u = jnp.tanh(u)
    u = jnp.dot(u.astype(jnp.bfloat16), wu2_ref[...],
                preferred_element_type=jnp.float32) + bu2_ref[...]       # [TB, E] f32

    # ---- news tower: all C candidates of this tile in one fused matmul ----
    cand = cand_ref[...].reshape(C * TB, D)      # free collapse (merges leading dims)
    n = jnp.dot(cand, wn1_ref[...],
                preferred_element_type=jnp.float32) + bn1_ref[...]
    n = jnp.tanh(n)
    n = jnp.dot(n.astype(jnp.bfloat16), wn2_ref[...],
                preferred_element_type=jnp.float32) + bn2_ref[...]       # [C*TB, E]
    n = n.reshape(C, TB, EMB_DIM)

    # ---- score[c, b] = sum_e u[b, e] * n[c, b, e]  (lane-dense [C, TB] store) ----
    score_ref[...] = jnp.sum(u[None, :, :] * n, axis=-1)


def baseline_forward(user_clicked_newindex, candidate_newsindex, params):
    """user_clicked_newindex: [B, H] int32; candidate_newsindex: [B, C] int32."""
    emb = params["emb"]                                   # [num_news, 400] bf16
    B, H = user_clicked_newindex.shape
    C = candidate_newsindex.shape[1]

    # Row tile: up to 128 users per grid step, padded to a multiple of 16 so
    # bf16 sublane packing of the [TB, 400] slabs is clean.
    TB = min(128, _round_up(B, 16))
    B_pad = _round_up(B, TB)

    uc = jnp.pad(user_clicked_newindex, ((0, B_pad - B), (0, 0)))
    cd = jnp.pad(candidate_newsindex, ((0, B_pad - B), (0, 0)))

    # Glue gathers (XLA): history gathered ONCE per user (no x5 repeat),
    # history-major; candidates gathered candidate-major so the kernel block
    # collapses freely to [C*TB, 400].
    # TODO(synk): replace with scalar-prefetched indices + in-kernel DMA gather
    # from the HBM embedding table to avoid materialising clicked_emb in HBM.
    clicked_emb = emb[uc.T]                               # [H, B_pad, 400] bf16
    cand_emb = emb[cd.T]                                  # [C, B_pad, 400] bf16

    grid = (B_pad // TB,)
    grid_spec = pltpu.PrefetchScalarGridSpec(
        num_scalar_prefetch=0,
        grid=grid,
        in_specs=[
            pl.BlockSpec((H, TB, D_TITLE), lambda i: (0, i, 0)),   # clicked
            pl.BlockSpec((C, TB, D_TITLE), lambda i: (0, i, 0)),   # candidates
            pl.BlockSpec((D_TITLE, EMB_DIM), lambda i: (0, 0)),    # wu1
            pl.BlockSpec((1, EMB_DIM), lambda i: (0, 0)),          # bu1
            pl.BlockSpec((EMB_DIM, EMB_DIM), lambda i: (0, 0)),    # wu2
            pl.BlockSpec((1, EMB_DIM), lambda i: (0, 0)),          # bu2
            pl.BlockSpec((D_TITLE, EMB_DIM), lambda i: (0, 0)),    # wn1
            pl.BlockSpec((1, EMB_DIM), lambda i: (0, 0)),          # bn1
            pl.BlockSpec((EMB_DIM, EMB_DIM), lambda i: (0, 0)),    # wn2
            pl.BlockSpec((1, EMB_DIM), lambda i: (0, 0)),          # bn2
        ],
        out_specs=pl.BlockSpec((C, TB), lambda i: (0, i)),
    )

    score_cb = pl.pallas_call(
        baseline_kernel,
        out_shape=jax.ShapeDtypeStruct((C, B_pad), jnp.float32),
        grid_spec=grid_spec,
        compiler_params=pltpu.CompilerParams(
            dimension_semantics=("parallel",)),
    )(clicked_emb, cand_emb,
      params["wu1"], params["bu1"], params["wu2"], params["bu2"],
      params["wn1"], params["bn1"], params["wn2"], params["bn2"])

    return score_cb[:, :B].T                              # [B, C]


def init_params(key, num_news):
    """f32 reference params.  Linear weights stored as [in, out] (torch W.T)."""
    ks = jax.random.split(key, 9)
    s = 0.05
    return {
        "news_title_embedding": jax.random.normal(ks[0], (num_news, D_TITLE),
                                                  jnp.float32),
        "wu1": s * jax.random.normal(ks[1], (D_TITLE, EMB_DIM), jnp.float32),
        "bu1": s * jax.random.normal(ks[2], (EMB_DIM,), jnp.float32),
        "wu2": s * jax.random.normal(ks[3], (EMB_DIM, EMB_DIM), jnp.float32),
        "bu2": s * jax.random.normal(ks[4], (EMB_DIM,), jnp.float32),
        "wn1": s * jax.random.normal(ks[5], (D_TITLE, EMB_DIM), jnp.float32),
        "bn1": s * jax.random.normal(ks[6], (EMB_DIM,), jnp.float32),
        "wn2": s * jax.random.normal(ks[7], (EMB_DIM, EMB_DIM), jnp.float32),
        "bn2": s * jax.random.normal(ks[8], (EMB_DIM,), jnp.float32),
    }


def prepare_params(p):
    """One-time transform to kernel-ready params: bf16 storage / MXU inputs,
    /10 pooling divisor folded into wu1, biases kept f32 as [1, E] rows."""
    return {
        "emb": p["news_title_embedding"].astype(jnp.bfloat16),
        "wu1": (p["wu1"] * 0.1).astype(jnp.bfloat16),
        "bu1": p["bu1"].reshape(1, -1).astype(jnp.float32),
        "wu2": p["wu2"].astype(jnp.bfloat16),
        "bu2": p["bu2"].reshape(1, -1).astype(jnp.float32),
        "wn1": p["wn1"].astype(jnp.bfloat16),
        "bn1": p["bn1"].reshape(1, -1).astype(jnp.float32),
        "wn2": p["wn2"].astype(jnp.bfloat16),
        "bn2": p["bn2"].reshape(1, -1).astype(jnp.float32),
    }


def reference_forward(user_clicked_newindex, candidate_newsindex, p):
    """Pure-JAX f32 reference mirroring the PyTorch forward exactly."""
    emb = p["news_title_embedding"]
    B, H = user_clicked_newindex.shape
    C = candidate_newsindex.shape[1]
    uc = jnp.broadcast_to(user_clicked_newindex[:, None, :], (B, C, H))
    u = jnp.sum(emb[uc], axis=2) / 10.0                    # [B, C, 400]
    u = jnp.tanh(u @ p["wu1"] + p["bu1"])
    u = u @ p["wu2"] + p["bu2"]
    n = emb[candidate_newsindex]                           # [B, C, 400]
    n = jnp.tanh(n @ p["wn1"] + p["bn1"])
    n = n @ p["wn2"] + p["bn2"]
    return jnp.sum(u * n, axis=-1)                         # [B, C]


if __name__ == "__main__":
    key = jax.random.PRNGKey(0)
    k_param, k_click, k_cand = jax.random.split(key, 3)

    NUM_NEWS = 64
    B, H, C = 2, 10, 5   # batch, clicked-history length, 5 candidates (fixed by module)

    raw_params = init_params(k_param, NUM_NEWS)
    kernel_params = prepare_params(raw_params)

    user_index = jnp.arange(B, dtype=jnp.int32)   # unused, as in the torch forward
    user_clicked_newindex = jax.random.randint(k_click, (B, H), 0, NUM_NEWS,
                                               dtype=jnp.int32)
    candidate_newsindex = jax.random.randint(k_cand, (B, C), 0, NUM_NEWS,
                                             dtype=jnp.int32)

    fwd = jax.jit(baseline_forward)
    score = jax.block_until_ready(fwd(user_clicked_newindex,
                                      candidate_newsindex, kernel_params))

    ref = reference_forward(user_clicked_newindex, candidate_newsindex, raw_params)
    assert score.shape == (B, C)
    # bf16 storage/MXU inputs (f32 accumulate) -> relaxed tolerance vs f32 ref.
    assert jnp.allclose(score, ref, atol=5e-2, rtol=5e-2), (
        score, ref, jnp.max(jnp.abs(score - ref)))

    print("KERNEL_OK")
</pallas_src>

<mosaic_0001>
module attributes {stable_mosaic.version = 11 : i64} {
  func.func @baseline_kernel(%arg0: i32, %arg1: memref<10x16x400xbf16, #tpu.memory_space<vmem>>, %arg2: memref<5x16x400xbf16, #tpu.memory_space<vmem>>, %arg3: memref<400x128xbf16, #tpu.memory_space<vmem>>, %arg4: memref<1x128xf32, #tpu.memory_space<vmem>>, %arg5: memref<128x128xbf16, #tpu.memory_space<vmem>>, %arg6: memref<1x128xf32, #tpu.memory_space<vmem>>, %arg7: memref<400x128xbf16, #tpu.memory_space<vmem>>, %arg8: memref<1x128xf32, #tpu.memory_space<vmem>>, %arg9: memref<128x128xbf16, #tpu.memory_space<vmem>>, %arg10: memref<1x128xf32, #tpu.memory_space<vmem>>, %arg11: memref<5x16xf32, #tpu.memory_space<vmem>>) attributes {dimension_semantics = [#tpu.dimension_semantics<parallel>], iteration_bounds = array<i64: 1>, scalar_prefetch = 0 : i64, scratch_operands = 0 : i64, tpu.core_type = #tpu.core_type<tc>, window_params = [{transform_indices = @transform_0, window_bounds = array<i64: 10, 16, 400>}, {transform_indices = @transform_1, window_bounds = array<i64: 5, 16, 400>}, {pipeline_mode = #tpu.pipeline_mode<synchronous>, transform_indices = @transform_2, window_bounds = array<i64: 400, 128>}, {pipeline_mode = #tpu.pipeline_mode<synchronous>, transform_indices = @transform_3, window_bounds = array<i64: 1, 128>}, {pipeline_mode = #tpu.pipeline_mode<synchronous>, transform_indices = @transform_4, window_bounds = array<i64: 128, 128>}, {pipeline_mode = #tpu.pipeline_mode<synchronous>, transform_indices = @transform_5, window_bounds = array<i64: 1, 128>}, {pipeline_mode = #tpu.pipeline_mode<synchronous>, transform_indices = @transform_6, window_bounds = array<i64: 400, 128>}, {pipeline_mode = #tpu.pipeline_mode<synchronous>, transform_indices = @transform_7, window_bounds = array<i64: 1, 128>}, {pipeline_mode = #tpu.pipeline_mode<synchronous>, transform_indices = @transform_8, window_bounds = array<i64: 128, 128>}, {pipeline_mode = #tpu.pipeline_mode<synchronous>, transform_indices = @transform_9, window_bounds = array<i64: 1, 128>}, {transform_indices = @transform_10, window_bounds = array<i64: 5, 16>}]} {
    %c0 = arith.constant 0 : index
    %c0_0 = arith.constant 0 : index
    %c0_1 = arith.constant 0 : index
    %0 = vector.load %arg1[%c0, %c0_0, %c0_1] : memref<10x16x400xbf16, #tpu.memory_space<vmem>>, vector<10x16x400xbf16>
    %1 = arith.extf %0 : vector<10x16x400xbf16> to vector<10x16x400xf32>
    %cst = arith.constant dense<0.000000e+00> : vector<16x400xf32>
    %2 = vector.multi_reduction <add>, %1, %cst [0] : vector<10x16x400xf32> to vector<16x400xf32>
    %3 = arith.truncf %2 : vector<16x400xf32> to vector<16x400xbf16>
    %c0_2 = arith.constant 0 : index
    %c0_3 = arith.constant 0 : index
    %4 = vector.load %arg3[%c0_2, %c0_3] : memref<400x128xbf16, #tpu.memory_space<vmem>>, vector<400x128xbf16>
    %cst_4 = arith.constant dense<0.000000e+00> : vector<16x128xf32>
    %5 = tpu.matmul %3, %4, %cst_4 {dimension_numbers = #tpu.dot_dimension_numbers<[1], [0], [0], [1], [0, 0, 1, 1], [], []>} : vector<16x400xbf16>, vector<400x128xbf16>, vector<16x128xf32> -> vector<16x128xf32>
    %c0_5 = arith.constant 0 : index
    %c0_6 = arith.constant 0 : index
    %6 = vector.load %arg4[%c0_5, %c0_6] : memref<1x128xf32, #tpu.memory_space<vmem>>, vector<1x128xf32>
    %7 = vector.broadcast %6 : vector<1x128xf32> to vector<16x128xf32>
    %8 = arith.addf %5, %7 : vector<16x128xf32>
    %9 = math.tanh %8 : vector<16x128xf32>
    %10 = arith.truncf %9 : vector<16x128xf32> to vector<16x128xbf16>
    %c0_7 = arith.constant 0 : index
    %c0_8 = arith.constant 0 : index
    %11 = vector.load %arg5[%c0_7, %c0_8] : memref<128x128xbf16, #tpu.memory_space<vmem>>, vector<128x128xbf16>
    %cst_9 = arith.constant dense<0.000000e+00> : vector<16x128xf32>
    %12 = tpu.matmul %10, %11, %cst_9 {dimension_numbers = #tpu.dot_dimension_numbers<[1], [0], [0], [1], [0, 0, 1, 1], [], []>} : vector<16x128xbf16>, vector<128x128xbf16>, vector<16x128xf32> -> vector<16x128xf32>
    %c0_10 = arith.constant 0 : index
    %c0_11 = arith.constant 0 : index
    %13 = vector.load %arg6[%c0_10, %c0_11] : memref<1x128xf32, #tpu.memory_space<vmem>>, vector<1x128xf32>
    %14 = vector.broadcast %13 : vector<1x128xf32> to vector<16x128xf32>
    %15 = arith.addf %12, %14 : vector<16x128xf32>
    %c0_12 = arith.constant 0 : index
    %c0_13 = arith.constant 0 : index
    %c0_14 = arith.constant 0 : index
    %16 = vector.load %arg2[%c0_12, %c0_13, %c0_14] : memref<5x16x400xbf16, #tpu.memory_space<vmem>>, vector<5x16x400xbf16>
    %17 = vector.shape_cast %16 : vector<5x16x400xbf16> to vector<80x400xbf16>
    %c0_15 = arith.constant 0 : index
    %c0_16 = arith.constant 0 : index
    %18 = vector.load %arg7[%c0_15, %c0_16] : memref<400x128xbf16, #tpu.memory_space<vmem>>, vector<400x128xbf16>
    %cst_17 = arith.constant dense<0.000000e+00> : vector<80x128xf32>
    %19 = tpu.matmul %17, %18, %cst_17 {dimension_numbers = #tpu.dot_dimension_numbers<[1], [0], [0], [1], [0, 0, 1, 1], [], []>} : vector<80x400xbf16>, vector<400x128xbf16>, vector<80x128xf32> -> vector<80x128xf32>
    %c0_18 = arith.constant 0 : index
    %c0_19 = arith.constant 0 : index
    %20 = vector.load %arg8[%c0_18, %c0_19] : memref<1x128xf32, #tpu.memory_space<vmem>>, vector<1x128xf32>
    %21 = vector.broadcast %20 : vector<1x128xf32> to vector<80x128xf32>
    %22 = arith.addf %19, %21 : vector<80x128xf32>
    %23 = math.tanh %22 : vector<80x128xf32>
    %24 = arith.truncf %23 : vector<80x128xf32> to vector<80x128xbf16>
    %c0_20 = arith.constant 0 : index
    %c0_21 = arith.constant 0 : index
    %25 = vector.load %arg9[%c0_20, %c0_21] : memref<128x128xbf16, #tpu.memory_space<vmem>>, vector<128x128xbf16>
    %cst_22 = arith.constant dense<0.000000e+00> : vector<80x128xf32>
    %26 = tpu.matmul %24, %25, %cst_22 {dimension_numbers = #tpu.dot_dimension_numbers<[1], [0], [0], [1], [0, 0, 1, 1], [], []>} : vector<80x128xbf16>, vector<128x128xbf16>, vector<80x128xf32> -> vector<80x128xf32>
    %c0_23 = arith.constant 0 : index
    %c0_24 = arith.constant 0 : index
    %27 = vector.load %arg10[%c0_23, %c0_24] : memref<1x128xf32, #tpu.memory_space<vmem>>, vector<1x128xf32>
    %28 = vector.broadcast %27 : vector<1x128xf32> to vector<80x128xf32>
    %29 = arith.addf %26, %28 : vector<80x128xf32>
    %30 = vector.shape_cast %29 : vector<80x128xf32> to vector<5x16x128xf32>
    %31 = vector.shape_cast %15 : vector<16x128xf32> to vector<1x16x128xf32>
    %32 = vector.broadcast %31 : vector<1x16x128xf32> to vector<5x16x128xf32>
    %33 = arith.mulf %32, %30 : vector<5x16x128xf32>
    %cst_25 = arith.constant dense<0.000000e+00> : vector<5x16xf32>
    %34 = vector.multi_reduction <add>, %33, %cst_25 [2] : vector<5x16x128xf32> to vector<5x16xf32>
    %c0_26 = arith.constant 0 : index
    %c0_27 = arith.constant 0 : index
    %35 = vector.load %arg11[%c0_26, %c0_27] : memref<5x16xf32, #tpu.memory_space<vmem>>, vector<5x16xf32>
    tpu.vector_store %arg11[%c0_26, %c0_27], %34 {strides = array<i32>} : memref<5x16xf32, #tpu.memory_space<vmem>>, vector<5x16xf32>,
    return
  }
  func.func @transform_0(%arg0: i32) -> (i32, i32, i32) {
    %c0_i32 = arith.constant 0 : i32
    %c0_i32_0 = arith.constant 0 : i32
    %c0_i32_1 = arith.constant 0 : i32
    return %c0_i32, %arg0, %c0_i32_0 : i32, i32, i32
  }
  func.func @transform_1(%arg0: i32) -> (i32, i32, i32) {
    %c0_i32 = arith.constant 0 : i32
    %c0_i32_0 = arith.constant 0 : i32
    %c0_i32_1 = arith.constant 0 : i32
    return %c0_i32, %arg0, %c0_i32_0 : i32, i32, i32
  }
  func.func @transform_2(%arg0: i32) -> (i32, i32) {
    %c0_i32 = arith.constant 0 : i32
    %c0_i32_0 = arith.constant 0 : i32
    %c0_i32_1 = arith.constant 0 : i32
    return %c0_i32, %c0_i32_0 : i32, i32
  }
  func.func @transform_3(%arg0: i32) -> (i32, i32) {
    %c0_i32 = arith.constant 0 : i32
    %c0_i32_0 = arith.constant 0 : i32
    %c0_i32_1 = arith.constant 0 : i32
    return %c0_i32, %c0_i32_0 : i32, i32
  }
  func.func @transform_4(%arg0: i32) -> (i32, i32) {
    %c0_i32 = arith.constant 0 : i32
    %c0_i32_0 = arith.constant 0 : i32
    %c0_i32_1 = arith.constant 0 : i32
    return %c0_i32, %c0_i32_0 : i32, i32
  }
  func.func @transform_5(%arg0: i32) -> (i32, i32) {
    %c0_i32 = arith.constant 0 : i32
    %c0_i32_0 = arith.constant 0 : i32
    %c0_i32_1 = arith.constant 0 : i32
    return %c0_i32, %c0_i32_0 : i32, i32
  }
  func.func @transform_6(%arg0: i32) -> (i32, i32) {
    %c0_i32 = arith.constant 0 : i32
    %c0_i32_0 = arith.constant 0 : i32
    %c0_i32_1 = arith.constant 0 : i32
    return %c0_i32, %c0_i32_0 : i32, i32
  }
  func.func @transform_7(%arg0: i32) -> (i32, i32) {
    %c0_i32 = arith.constant 0 : i32
    %c0_i32_0 = arith.constant 0 : i32
    %c0_i32_1 = arith.constant 0 : i32
    return %c0_i32, %c0_i32_0 : i32, i32
  }
  func.func @transform_8(%arg0: i32) -> (i32, i32) {
    %c0_i32 = arith.constant 0 : i32
    %c0_i32_0 = arith.constant 0 : i32
    %c0_i32_1 = arith.constant 0 : i32
    return %c0_i32, %c0_i32_0 : i32, i32
  }
  func.func @transform_9(%arg0: i32) -> (i32, i32) {
    %c0_i32 = arith.constant 0 : i32
    %c0_i32_0 = arith.constant 0 : i32
    %c0_i32_1 = arith.constant 0 : i32
    return %c0_i32, %c0_i32_0 : i32, i32
  }
  func.func @transform_10(%arg0: i32) -> (i32, i32) {
    %c0_i32 = arith.constant 0 : i32
    %c0_i32_0 = arith.constant 0 : i32
    return %c0_i32, %arg0 : i32, i32
  }
}

</mosaic_0001>

<bundles_post_ra>
// kernel: baseline_forward.1
= control target key start
LH: loop header
LB: loop body
LE: loop exit
PB: predicated region body
PF: predicated region fallthrough
CT: control target
= control target key end

     0   :  { %v1771_v0 = vmov 0   ;;  %vm183_vm0 = vcmask 130048   ;;  %vm1773_vm1 = vmmov 0   ;;  %vm1353_vm2 = vcmask 130112   ;;  %s2448_s2 = inlined_call_operand.vmem [shape: bf16[400,128], index: 2, kind: input, shape index: {}]   ;;  %s2449_s0 = inlined_call_operand.vmem [shape: bf16[10,16,400], index: 0, kind: input, shape index: {}]   ;;  %s2450_s4 = inlined_call_operand.vmem [shape: bf16[128,128], index: 4, kind: input, shape index: {}]   ;;  %s2451_s6 = inlined_call_operand.vmem [shape: bf16[400,128], index: 6, kind: input, shape index: {}]   ;;  %s2452_s1 = inlined_call_operand.vmem [shape: bf16[5,16,400], index: 1, kind: input, shape index: {}]   ;;  %s2453_s3 = inlined_call_operand.vmem [shape: f32[1,128], index: 3, kind: input, shape index: {}]   ;;  %s2454_s8 = inlined_call_operand.vmem [shape: bf16[128,128], index: 8, kind: input, shape index: {}]   ;;  %s2455_s7 = inlined_call_operand.vmem [shape: f32[1,128], index: 7, kind: input, shape index: {}]   ;;  %s2456_s5 = inlined_call_operand.vmem [shape: f32[1,128], index: 5, kind: input, shape index: {}]   ;;  %s2457_s9 = inlined_call_operand.vmem [shape: f32[1,128], index: 9, kind: input, shape index: {}]   ;;  %s2458_s10 = inlined_call_operand.vmem [shape: f32[5,16], index: 10, kind: output, shape index: {}]  }
   0x1   :  { %504 = vmatprep.subr.bf16.mxu1 %v1771_v0  ;;  %v1651_v1 = vld [vmem:[%s2448_s2 + $0x40] sm:$0xff]   ;;  %v1654_v4 = vld [vmem:[%s2448_s2 + $0x48] sm:$0xff]   ;;  %v1657_v7 = vld [vmem:[%s2448_s2 + $0x50] sm:$0xff]   ;;  %vm1391_vm3 = vcmask 1041409   ;;  %vm1393_vm4 = vcmask 1042434   ;;  %vm1395_vm5 = vcmask 1043459  }
   0x2   :  { %v1652_v2 = vld [vmem:[%s2448_s2 + $0x80] sm:$0xff]   ;;  %1502 = vmatprep.subr.bf16.mxu0 %v1651_v1  ;;  %v1655_v5 = vld [vmem:[%s2448_s2 + $0x88] sm:$0xff]   ;;  %v1658_v8 = vld [vmem:[%s2448_s2 + $0x90] sm:$0xff]   ;;  %vm1397_vm6 = vcmask 1044484   ;;  %vm1400_vm7 = vcmask 126976  }
   0x3   :  { %v1653_v3 = vld [vmem:[%s2448_s2] sm:$0xff]   ;;  %505 = vmatpush1.bf16.msra.mxu1 %v1652_v2  ;;  %v1656_v6 = vld [vmem:[%s2448_s2 + $0x8] sm:$0xff]   ;;  %v1659_v9 = vld [vmem:[%s2448_s2 + $0x10] sm:$0xff]  }
   0x4   :  { %1503 = vmatpush3.bf16.msra.mxu0 %v1653_v3  ;;  %506 = vmatprep.subr.bf16.mxu1 %v1771_v0  ;;  %v1660_v10 = vld [vmem:[%s2448_s2 + $0x58] sm:$0xff]   ;;  %v1663_v13 = vld [vmem:[%s2448_s2 + $0x60] sm:$0xff]   ;;  %v1666_v16 = vld [vmem:[%s2448_s2 + $0x68] sm:$0xff]   ;;  %v1772_v3 = vmov 0.0  }
   0x5   :  { %1504 = vmatprep.subr.bf16.mxu0 %v1654_v4  ;;  %v1661_v11 = vld [vmem:[%s2448_s2 + $0x98] sm:$0xff]   ;;  %v1664_v14 = vld [vmem:[%s2448_s2 + $0xa0] sm:$0xff]   ;;  %v1667_v17 = vld [vmem:[%s2448_s2 + $0xa8] sm:$0xff]  }
   0x6   :  { %v1662_v12 = vld [vmem:[%s2448_s2 + $0x18] sm:$0xff]   ;;  %v1665_v15 = vld [vmem:[%s2448_s2 + $0x20] sm:$0xff]   ;;  %v1668_v18 = vld [vmem:[%s2448_s2 + $0x28] sm:$0xff]  }
   0x7   :  { %507 = vmatpush1.bf16.msra.mxu1 %v1655_v5  ;;  %v1669_v19 = vld [vmem:[%s2448_s2 + $0x70] sm:$0xff]   ;;  %v1672_v22 = vld [vmem:[%s2448_s2 + $0x78] sm:$0xff]   ;;  %v36_v23 = vld [vmem:[%s2449_s0] sm:$0xff] }
   0x8   :  { %1505 = vmatpush3.bf16.msra.mxu0 %v1656_v6  ;;  %508 = vmatprep.subr.bf16.mxu1 %v1771_v0  ;;  %v1670_v20 = vld [vmem:[%s2448_s2 + $0xb0] sm:$0xff]   ;;  %v40_v25 = vld [vmem:[%s2449_s0 + $0x20] sm:$0xff]  ;;  %v1673_v27 = vld [vmem:[%s2448_s2 + $0xb8] sm:$0xff]   ;;  %v76_v33 = vunpack.c.l.bf16 %v36_v23  ;;  %v77_v34 = vunpack.c.h.bf16 %v36_v23 }
   0x9   :  { %1506 = vmatprep.subr.bf16.mxu0 %v1657_v7  ;;  %v1671_v21 = vld [vmem:[%s2448_s2 + $0x30] sm:$0xff]   ;;  %v1920_v28 = vld [vmem:[%s2449_s0 + $0x40] sm:$0xff]  ;;  %v1674_v30 = vld [vmem:[%s2448_s2 + $0x38] sm:$0xff]   ;;  %v84_v40 = vunpack.c.l.bf16 %v40_v25  ;;  %v85_v41 = vunpack.c.h.bf16 %v40_v25 }
   0xa   :  { %v38_v24 = vld [vmem:[%s2449_s0 + $0x10] sm:$0xff]  ;;  %v1934_v31 = vld [vmem:[%s2449_s0 + $0x60] sm:$0xff]  ;;  %v92_v46 = vunpack.c.l.bf16 %v1920_v28  ;;  %v93_v47 = vunpack.c.h.bf16 %v1920_v28  ;;  %v2038_v25 = vld [vmem:[%s2449_s0 + $0x18] sm:$0xff] }
   0xb   :  { %509 = vmatpush1.bf16.msra.mxu1 %v1658_v8  ;;  %v42_v26 = vld [vmem:[%s2449_s0 + $0x30] sm:$0xff]  ;;  %v80_v35 = vunpack.c.l.bf16 %v38_v24  ;;  %v81_v36 = vunpack.c.h.bf16 %v38_v24  ;;  %v1944_v37 = vld [vmem:[%s2449_s0 + $0x80] sm:$0xff]  ;;  %v100_v51 = vunpack.c.l.bf16 %v1934_v31  ;;  %v101_v52 = vunpack.c.h.bf16 %v1934_v31  ;;  %v2033_v24 = vld [vmem:[%s2449_s0 + $0x8] sm:$0xff] }
   0xc   :  { %1507 = vmatpush3.bf16.msra.mxu0 %v1659_v9  ;;  %510 = vmatprep.subr.bf16.mxu1 %v1771_v0  ;;  %v1925_v29 = vld [vmem:[%s2449_s0 + $0x50] sm:$0xff]  ;;  %v1954_v39 = vld [vmem:[%s2449_s0 + $0xa0] sm:$0xff]  ;;  %v88_v42 = vunpack.c.l.bf16 %v42_v26  ;;  %v89_v43 = vunpack.c.h.bf16 %v42_v26  ;;  %v108_v56 = vunpack.c.l.bf16 %v1944_v37  ;;  %v109_v57 = vunpack.c.h.bf16 %v1944_v37  ;;  %v2043_v26 = vld [vmem:[%s2449_s0 + $0x28] sm:$0xff] }
   0xd   :  { %1508 = vmatprep.subr.bf16.mxu0 %v1660_v10  ;;  %v1939_v32 = vld [vmem:[%s2449_s0 + $0x70] sm:$0xff]  ;;  %v1964_v45 = vld [vmem:[%s2449_s0 + $0xc0] sm:$0xff]  ;;  %v96_v48 = vunpack.c.l.bf16 %v1925_v29  ;;  %v97_v49 = vunpack.c.h.bf16 %v1925_v29  ;;  %v116_v62 = vunpack.c.l.bf16 %v1954_v39  ;;  %v117_v63 = vunpack.c.h.bf16 %v1954_v39  ;;  %v2052_v31 = vld [vmem:[%s2449_s0 + $0x48] sm:$0xff] }
   0xe   :  { %v1949_v38 = vld [vmem:[%s2449_s0 + $0x90] sm:$0xff]  ;;  %v104_v53 = vunpack.c.l.bf16 %v1939_v32  ;;  %v105_v54 = vunpack.c.h.bf16 %v1939_v32  ;;  %v1675_v55 = vld [vmem:[%s2448_s2 + $0xc0] sm:$0xff]   ;;  %v124_v4 = vunpack.c.l.bf16 %v1964_v45  ;;  %v125_v5 = vunpack.c.h.bf16 %v1964_v45  ;;  %v2062_v37 = vld [vmem:[%s2449_s0 + $0x58] sm:$0xff] }
   0xf   :  { %511 = vmatpush1.bf16.msra.mxu1 %v1661_v11  ;;  %v1959_v44 = vld [vmem:[%s2449_s0 + $0xb0] sm:$0xff]  ;;  %v112_v58 = vunpack.c.l.bf16 %v1949_v38  ;;  %v113_v59 = vunpack.c.h.bf16 %v1949_v38  ;;  %v1990_v60 = vld [vmem:[%s2449_s0 + $0xe0] sm:$0xff]  ;;  %v165_v10 = vadd.f32 %v85_v41, %v77_v34  ;;  %v212_v11 = vadd.f32 %v89_v43, %v81_v36  ;;  %v2057_v36 = vld [vmem:[%s2449_s0 + $0x38] sm:$0xff] }
  0x10   :  { %1509 = vmatpush3.bf16.msra.mxu0 %v1662_v12  ;;  %512 = vmatprep.subr.bf16.mxu1 %v1771_v0  ;;  %v1973_v50 = vld [vmem:[%s2449_s0 + $0xd0] sm:$0xff]  ;;  %v120_v1 = vunpack.c.l.bf16 %v1959_v44  ;;  %v121_v2 = vunpack.c.h.bf16 %v1959_v44  ;;  %v2009_v8 = vld [vmem:[%s2449_s0 + $0x100] sm:$0xff]  ;;  %v156_v12 = vadd.f32 %v84_v40, %v76_v33  ;;  %v2067_v38 = vld [vmem:[%s2449_s0 + $0x68] sm:$0xff] }
  0x11   :  { %1510 = vmatprep.subr.bf16.mxu0 %v1663_v13  ;;  %v1995_v61 = vld [vmem:[%s2449_s0 + $0xf0] sm:$0xff]  ;;  %v128_v6 = vunpack.c.l.bf16 %v1973_v50  ;;  %v129_v7 = vunpack.c.h.bf16 %v1973_v50  ;;  %v203_v13 = vadd.f32 %v88_v42, %v80_v35  ;;  %v141_v28 = vunpack.c.h.bf16 %v2009_v8  ;;  %v2076_v43 = vld [vmem:[%s2449_s0 + $0x78] sm:$0xff] }
  0x12   :  { %v2014_v9 = vld [vmem:[%s2449_s0 + $0x110] sm:$0xff]  ;;  %v83_v50 = vunpack.c.h.bf16 %v2038_v25 }
  0x13   :  { %513 = vmatpush1.bf16.msra.mxu1 %v1664_v14  ;;  %v2019_v14 = vld [vmem:[%s2449_s0 + $0x120] sm:$0xff]  ;;  %v204_v23 = vadd.f32 %v203_v13, %v96_v48  ;;  %v144_v29 = vunpack.c.l.bf16 %v2014_v9  ;;  %v2081_v48 = vld [vmem:[%s2449_s0 + $0x88] sm:$0xff] }
  0x14   :  { %1511 = vmatpush3.bf16.msra.mxu0 %v1665_v15  ;;  %514 = vmatprep.subr.bf16.mxu1 %v1771_v0  ;;  %v2024_v15 = vld [vmem:[%s2449_s0 + $0x130] sm:$0xff]  ;;  %v148_v39 = vunpack.c.l.bf16 %v2019_v14  ;;  %v149_v40 = vunpack.c.h.bf16 %v2019_v14  ;;  %v2108_v13 = vld [vmem:[%s2449_s0 + $0xc8] sm:$0xff] }
  0x15   :  { %1512 = vmatprep.subr.bf16.mxu0 %v1666_v16  ;;  %v132_v16 = vunpack.c.l.bf16 %v1990_v60  ;;  %v205_v35 = vadd.f32 %v204_v23, %v104_v53  ;;  %v152_v41 = vunpack.c.l.bf16 %v2024_v15  ;;  %v153_v42 = vunpack.c.h.bf16 %v2024_v15  ;;  %v2113_v14 = vld [vmem:[%s2449_s0 + $0xe8] sm:$0xff] }
  0x16   :  { %v127_v23 = vunpack.c.h.bf16 %v2108_v13 }
  0x17   :  { %515 = vmatpush1.bf16.msra.mxu1 %v1667_v17  ;;  %v133_v17 = vunpack.c.h.bf16 %v1990_v60  ;;  %v107_v60 = vunpack.c.h.bf16 %v2076_v43 }
  0x18   :  { %1513 = vmatpush3.bf16.msra.mxu0 %v1668_v18  ;;  %516 = vmatprep.subr.bf16.mxu1 %v1771_v0  ;;  %v136_v18 = vunpack.c.l.bf16 %v1995_v61 }
  0x19   :  { %1514 = vmatprep.subr.bf16.mxu0 %v1669_v19  ;;  %v137_v19 = vunpack.c.h.bf16 %v1995_v61 }
  0x1b   :  { %517 = vmatpush1.bf16.msra.mxu1 %v1670_v20  ;;  %v166_v20 = vadd.f32 %v165_v10, %v93_v47  ;;  %v206_v47 = vadd.f32 %v205_v35, %v112_v58  ;;  %v99_v58 = vunpack.c.h.bf16 %v2062_v37 }
  0x1c   :  { %1515 = vmatpush3.bf16.msra.mxu0 %v1671_v21  ;;  %518 = vmatprep.subr.bf16.mxu1 %v1771_v0  ;;  %v213_v21 = vadd.f32 %v212_v11, %v97_v49  ;;  %v79_v49 = vunpack.c.h.bf16 %v2033_v24  ;;  %v2094_v11 = vld [vmem:[%s2449_s0 + $0x98] sm:$0xff] }
  0x1d   :  { %1516 = vmatprep.subr.bf16.mxu0 %v1672_v22  ;;  %v157_v22 = vadd.f32 %v156_v12, %v92_v46  ;;  %v167_v32 = vadd.f32 %v166_v20, %v101_v52  ;;  %v95_v52 = vunpack.c.h.bf16 %v2052_v31  ;;  %v115_v15 = vunpack.c.h.bf16 %v2094_v11 }
  0x1e   :  { %v214_v33 = vadd.f32 %v213_v21, %v105_v54 }
  0x1f   :  { %519 = vmatpush1.bf16.msra.mxu1 %v1673_v27  ;;  %v140_v27 = vunpack.c.l.bf16 %v2009_v8  ;;  %v158_v34 = vadd.f32 %v157_v22, %v100_v51  ;;  %v168_v44 = vadd.f32 %v167_v32, %v109_v57  ;;  %v87_v51 = vunpack.c.h.bf16 %v2043_v26 }
  0x20   :  { %1517 = vmatpush3.bf16.msra.mxu0 %v1674_v30  ;;  %520 = vmatprep.subr.bf16.mxu1 %v1771_v0  ;;  %v145_v30 = vunpack.c.h.bf16 %v2014_v9  ;;  %v215_v45 = vadd.f32 %v214_v33, %v113_v59  ;;  %v207_v57 = vadd.f32 %v206_v47, %v120_v1  ;;  %v103_v59 = vunpack.c.h.bf16 %v2067_v38  ;;  %v2124_v47 = vld [vmem:[%s2449_s0 + $0xb8] sm:$0xff] }
  0x21   :  { %1592 = vmatprep.subr.bf16.mxu0 %v1772_v3  ;;  %v159_v46 = vadd.f32 %v158_v34, %v108_v56  ;;  %v169_v53 = vadd.f32 %v168_v44, %v117_v63  ;;  %v91_v56 = vunpack.c.h.bf16 %v2057_v36  ;;  %v111_v63 = vunpack.c.h.bf16 %v2081_v48 }
  0x22   :  { %v216_v54 = vadd.f32 %v215_v45, %v121_v2  ;;  %v208_v10 = vadd.f32 %v207_v57, %v128_v6  ;;  %v184_v1 = vsel %vm183_vm0, %v79_v49, 0.0  ;;  %v185_v2 = vsel %vm183_vm0, %v87_v51, 0.0 }
  0x23   :  { %521 = vmatpush1.bf16.msra.mxu1 %v1675_v55  ;;  %v160_v55 = vadd.f32 %v159_v46, %v116_v62  ;;  %v170_v61 = vadd.f32 %v169_v53, %v125_v5  ;;  %v2099_v62 = vld [vmem:[%s2449_s0 + $0xa8] sm:$0xff]  ;;  %v187_v5 = vsel %vm183_vm0, %v95_v52, 0.0  ;;  %v186_v21 = vadd.f32 %v185_v2, %v184_v1  ;;  %v2146_v52 = vld [vmem:[%s2449_s0 + $0xf8] sm:$0xff] }
  0x24   :  { %v217_v8 = vadd.f32 %v216_v54, %v129_v7  ;;  %v209_v12 = vadd.f32 %v208_v10, %v136_v18  ;;  %v119_v20 = vunpack.c.h.bf16 %v2099_v62  ;;  %v135_v32 = vunpack.c.h.bf16 %v2113_v14  ;;  %v2151_v53 = vld [vmem:[%s2449_s0 + $0x118] sm:$0xff] }
  0x25   :  { %v161_v9 = vadd.f32 %v160_v55, %v124_v4  ;;  %v171_v4 = vadd.f32 %v170_v61, %v133_v17  ;;  %v189_v17 = vsel %vm183_vm0, %v103_v59, 0.0  ;;  %v188_v33 = vadd.f32 %v187_v5, %v186_v21  ;;  %v2159_v59 = vld [vmem:[%s2449_s0 + $0x128] sm:$0xff] }
  0x26   :  { %v218_v6 = vadd.f32 %v217_v8, %v137_v19  ;;  %v210_v22 = vadd.f32 %v209_v12, %v144_v29  ;;  %v191_v34 = vsel %vm183_vm0, %v111_v63, 0.0  ;;  %v231_v29 = vsel %vm183_vm0, %v91_v56, 0.0  ;;  %v1677_v5 = vld [vmem:[%s2450_s4 + $0x8] sm:$0xff]  }
  0x27   :  { %v162_v7 = vadd.f32 %v161_v9, %v132_v16  ;;  %v172_v19 = vadd.f32 %v171_v4, %v141_v28  ;;  %v190_v28 = vadd.f32 %v189_v17, %v188_v33  ;;  %v123_v54 = vunpack.c.h.bf16 %v2124_v47 }
  0x28   :  { %v219_v16 = vadd.f32 %v218_v6, %v145_v30  ;;  %v211_v46 = vadd.f32 %v210_v22, %v152_v41  ;;  %v233_v30 = vsel %vm183_vm0, %v99_v58, 0.0  ;;  %v193_v41 = vsel %vm183_vm0, %v119_v20, 0.0 }
  0x29   :  { %v163_v18 = vadd.f32 %v162_v7, %v140_v27  ;;  %v173_v35 = vadd.f32 %v172_v19, %v149_v40  ;;  %v230_v27 = vsel %vm183_vm0, %v83_v50, 0.0  ;;  %v2132_v40 = vld [vmem:[%s2449_s0 + $0xd8] sm:$0xff]  ;;  %v1676_v50 = vld [vmem:[%s2450_s4] sm:$0xff]   ;;  %v192_v55 = vadd.f32 %v191_v34, %v190_v28 }
  0x2a   :  { %v220_v44 = vadd.f32 %v219_v16, %v153_v42  ;;  %v232_v42 = vadd.f32 %v231_v29, %v230_v27  ;;  %v235_v57 = vsel %vm183_vm0, %v107_v60, 0.0  ;;  %v195_v56 = vsel %vm183_vm0, %v127_v23, 0.0 }
  0x2b   :  { %v164_v45 = vadd.f32 %v163_v18, %v148_v39  ;;  %v2137_v39 = vld [vmem:[%s2449_s0 + $0x108] sm:$0xff]  ;;  %v131_v61 = vunpack.c.h.bf16 %v2132_v40  ;;  %v194_v9 = vadd.f32 %v193_v41, %v192_v55  ;;  %v237_v10 = vsel %vm183_vm0, %v115_v15, 0.0  ;;  %v75_v15 = vld [vmem:[%s2449_s0 + $0x138] sm:$0xff] }
  0x2c   :  { %v250_v49 = vpack.c.bf16 %v220_v44, %v173_v35  ;;  %v234_v58 = vadd.f32 %v233_v30, %v232_v42  ;;  %v143_v8 = vunpack.c.h.bf16 %v2137_v39  ;;  %v139_v63 = vunpack.c.h.bf16 %v2146_v52 }
  0x2d   :  { %v249_v51 = vpack.c.bf16 %v211_v46, %v164_v45  ;;  %v147_v60 = vunpack.c.h.bf16 %v2151_v53  ;;  %v197_v1 = vsel %vm183_vm0, %v135_v32, 0.0  ;;  %v196_v4 = vadd.f32 %v195_v56, %v194_v9  ;;  %v1678_v32 = vld [vmem:[%s2450_s4 + $0x10] sm:$0xff]  }
  0x2e   :  { %495 = vmatprep.mubr.bf16.mxu0 %v250_v49  ;;  %v236_v2 = vadd.f32 %v235_v57, %v234_v58  ;;  %v239_v6 = vsel %vm183_vm0, %v123_v54, 0.0  ;;  %v78_v7 = vunpack.c.l.bf16 %v2033_v24  ;;  %v86_v12 = vunpack.c.l.bf16 %v2043_v26 }
  0x2f   :  { %496 = vmatmul.mubr.bf16.vlgmr.msra.gmra.mrb[0].mxu0 %v249_v51  ;;  %v151_v20 = vunpack.c.h.bf16 %v2159_v59  ;;  %v82_v17 = vunpack.c.l.bf16 %v2038_v25  ;;  %v90_v19 = vunpack.c.l.bf16 %v2057_v36  ;;  %v198_v16 = vadd.f32 %v197_v1, %v196_v4 }
  0x30   :  { %1593 = vmatpush3.bf16.msra.mxu0 %v1676_v50  ;;  %v238_v21 = vadd.f32 %v237_v10, %v236_v2  ;;  %v199_v18 = vsel %vm183_vm0, %v143_v8, 0.0  ;;  %v241_v24 = vsel %vm183_vm0, %v131_v61, 0.0  ;;  %v94_v26 = vunpack.c.l.bf16 %v2052_v31  ;;  %1608 = vmatprep.mubr.msk.bf16.mxu0 %vm1773_vm1, %v1772_v3 }
  0x31   :  { %1594 = vmatprep.subr.bf16.mxu0 %v1772_v3  ;;  %v98_v23 = vunpack.c.l.bf16 %v2062_v37  ;;  %v155_v33 = vunpack.c.h.bf16 %v75_v15  ;;  %v243_v25 = vsel %vm183_vm0, %v139_v63, 0.0  ;;  %v102_v36 = vunpack.c.l.bf16 %v2067_v38 }
  0x32   :  { %v240_v22 = vadd.f32 %v239_v6, %v238_v21  ;;  %v174_v34 = vadd.f32 %v86_v12, %v78_v7  ;;  %v200_v35 = vadd.f32 %v199_v18, %v198_v16  ;;  %v106_v31 = vunpack.c.l.bf16 %v2076_v43  ;;  %v1683_v12 = vld [vmem:[%s2451_s6 + $0x40] sm:$0xff]   ;;  %v1684_v21 = vld [vmem:[%s2450_s4 + $0x38] sm:$0xff]   ;;  %v1690_v16 = vld [vmem:[%s2451_s6 + $0x10] sm:$0xff]  }
  0x33   :  { %v221_v45 = vadd.f32 %v90_v19, %v82_v17  ;;  %v201_v37 = vsel %vm183_vm0, %v151_v20, 0.0  ;;  %v245_v46 = vsel %vm183_vm0, %v147_v60, 0.0  ;;  %v110_v28 = vunpack.c.l.bf16 %v2081_v48  ;;  %1533 = vmatprep.subr.bf16.mxu1 %v1683_v12  ;;  %v1686_v20 = vld [vmem:[%s2451_s6 + $0x48] sm:$0xff]   ;;  %v1689_v19 = vld [vmem:[%s2451_s6 + $0x50] sm:$0xff]   ;;  %v1692_v18 = vld [vmem:[%s2451_s6 + $0x58] sm:$0xff]  }
  0x34   :  { %1595 = vmatpush3.bf16.msra.mxu0 %v1677_v5  ;;  %v242_v44 = vadd.f32 %v241_v24, %v240_v22  ;;  %v175_v27 = vadd.f32 %v174_v34, %v94_v26  ;;  %v114_v30 = vunpack.c.l.bf16 %v2094_v11  ;;  %v247_v38 = vsel %vm183_vm0, %v155_v33, 0.0  ;;  %v1687_v17 = vld [vmem:[%s2451_s6 + $0x8] sm:$0xff]   ;;  %v1693_v24 = vld [vmem:[%s2451_s6 + $0x18] sm:$0xff]   ;;  %v1695_v26 = vld [vmem:[%s2451_s6 + $0x60] sm:$0xff]  }
  0x35   :  { %1596 = vmatprep.subr.bf16.mxu0 %v1772_v3  ;;  %v222_v49 = vadd.f32 %v221_v45, %v98_v23  ;;  %v118_v51 = vunpack.c.l.bf16 %v2099_v62  ;;  %v202_v43 = vadd.f32 %v201_v37, %v200_v35  ;;  %v122_v50 = vunpack.c.l.bf16 %v2124_v47  ;;  %v1696_v22 = vld [vmem:[%s2451_s6 + $0x20] sm:$0xff]   ;;  %v1698_v23 = vld [vmem:[%s2451_s6 + $0x68] sm:$0xff]   ;;  %v1701_v33 = vld [vmem:[%s2451_s6 + $0x70] sm:$0xff]  }
  0x36   :  { %v244_v29 = vadd.f32 %v243_v25, %v242_v44  ;;  %v176_v41 = vadd.f32 %v175_v27, %v102_v36  ;;  %v126_v48 = vunpack.c.l.bf16 %v2108_v13  ;;  %v130_v11 = vunpack.c.l.bf16 %v2132_v40  ;;  %v1702_v25 = vld [vmem:[%s2451_s6 + $0x30] sm:$0xff]   ;;  %v1704_v36 = vld [vmem:[%s2451_s6 + $0x78] sm:$0xff]  }
  0x37   :  { %v223_v54 = vadd.f32 %v222_v49, %v106_v31  ;;  %v134_v58 = vunpack.c.l.bf16 %v2113_v14  ;;  %v138_v62 = vunpack.c.l.bf16 %v2146_v52  ;;  %v142_v10 = vunpack.c.l.bf16 %v2137_v39  ;;  %v1679_v39 = vld [vmem:[%s2450_s4 + $0x18] sm:$0xff]   ;;  %v1680_v52 = vld [vmem:[%s2450_s4 + $0x20] sm:$0xff]  }
  0x38   :  { %1597 = vmatpush3.bf16.msra.mxu0 %v1678_v32  ;;  %v246_v42 = vadd.f32 %v245_v46, %v244_v29  ;;  %v177_v55 = vadd.f32 %v176_v41, %v110_v28  ;;  %v146_v47 = vunpack.c.l.bf16 %v2151_v53  ;;  %v150_v60 = vunpack.c.l.bf16 %v2159_v59  ;;  %v1681_v53 = vld [vmem:[%s2450_s4 + $0x28] sm:$0xff]   ;;  %v1682_v59 = vld [vmem:[%s2450_s4 + $0x30] sm:$0xff]   ;;  %v1705_v34 = vld [vmem:[%s2451_s6 + $0x38] sm:$0xff]  }
  0x39   :  { %1598 = vmatprep.subr.bf16.mxu0 %v1772_v3  ;;  %v224_v56 = vadd.f32 %v223_v54, %v114_v30  ;;  %v154_v40 = vunpack.c.l.bf16 %v75_v15  ;;  %v1685_v15 = vld [vmem:[%s2451_s6] sm:$0xff]   ;;  %v1699_v32 = vld [vmem:[%s2451_s6 + $0x28] sm:$0xff]  }
  0x3a   :  { %v248_v57 = vadd.f32 %v247_v38, %v246_v42  ;;  %v178_v61 = vadd.f32 %v177_v55, %v118_v51  ;;  %v1707_v35 = vld [vmem:[%s2452_s1] ss:$16 sps:$4 sm:$0xff]   ;;  %v1709_v44 = vld [vmem:[%s2452_s1 + $0x4] ss:$16 sps:$4 sm:$0xff]   ;;  %v1738_v12 = vld [vmem:[%s2452_s1 + $0x88] ss:$16 sps:$4 sm:$0xff]  }
  0x3b   :  { %v225_v9 = vadd.f32 %v224_v56, %v122_v50  ;;  %v1712_v31 = vld [vmem:[%s2452_s1 + $0x24] ss:$16 sps:$4 sm:$0xff]   ;;  %v1716_v45 = vld [vmem:[%s2452_s1 + $0x20] ss:$16 sps:$4 sm:$0xff]  }
  0x3c   :  { %v252_v8 = vpack.c.bf16 %v248_v57, %v202_v43  ;;  %v179_v63 = vadd.f32 %v178_v61, %v126_v48  ;;  %1599 = vmatpush3.bf16.msra.mxu0 %v1679_v39  ;;  %v1718_v37 = vld [vmem:[%s2452_s1 + $0x44] ss:$16 sps:$4 sm:$0xff]   ;;  %v1722_v46 = vld [vmem:[%s2452_s1 + $0x40] ss:$16 sps:$4 sm:$0xff]   ;;  %v1729_v39 = vld [vmem:[%s2452_s1 + $0x48] ss:$16 sps:$4 sm:$0xff]  }
  0x3d   :  { %v226_v13 = vadd.f32 %v225_v9, %v130_v11  ;;  %1600 = vmatprep.subr.bf16.mxu0 %v1772_v3  ;;  %v1724_v28 = vld [vmem:[%s2452_s1 + $0x64] ss:$16 sps:$4 sm:$0xff]   ;;  %v1728_v27 = vld [vmem:[%s2452_s1 + $0x60] ss:$16 sps:$4 sm:$0xff]  }
  0x3e   :  { %1432 = vmatprep.mubr.msk.bf16.mxu1 %vm183_vm0, %v252_v8  ;;  %v180_v1 = vadd.f32 %v179_v63, %v134_v58  ;;  %v1730_v29 = vld [vmem:[%s2452_s1 + $0x84] ss:$16 sps:$4 sm:$0xff]   ;;  %v1734_v30 = vld [vmem:[%s2452_s1 + $0x80] ss:$16 sps:$4 sm:$0xff]  }
  0x3f   :  { %v227_v2 = vadd.f32 %v226_v13, %v138_v62  ;;  %v1406_v50 = vld [vmem:[%s2453_s3] ss:$0 sm:$0xff]  ;;  %v1694_v13 = vld [vmem:[%s2451_s6 + $0x90] sm:$0xff]  }
  0x40   :  { %v181_v5 = vadd.f32 %v180_v1, %v142_v10  ;;  %1601 = vmatpush3.bf16.msra.mxu0 %v1680_v52  ;;  %v1688_v9 = vld [vmem:[%s2451_s6 + $0x80] sm:$0xff]   ;;  %v1714_v10 = vld [vmem:[%s2452_s1 + $0xc] ss:$16 sps:$4 sm:$0xff]  }
  0x41   :  { %v228_v14 = vadd.f32 %v227_v2, %v146_v47  ;;  %1602 = vmatprep.subr.bf16.mxu0 %v1772_v3  ;;  %v1691_v47 = vld [vmem:[%s2451_s6 + $0x88] sm:$0xff]   ;;  %v1700_v1 = vld [vmem:[%s2451_s6 + $0xa0] sm:$0xff]   ;;  %v1706_v2 = vld [vmem:[%s2451_s6 + $0xb0] sm:$0xff]  }
  0x42   :  { %v182_v4 = vadd.f32 %v181_v5, %v150_v60  ;;  %v1697_v60 = vld [vmem:[%s2451_s6 + $0x98] sm:$0xff]  }
  0x43   :  { %v229_v6 = vadd.f32 %v228_v14, %v154_v40  ;;  %v1703_v40 = vld [vmem:[%s2451_s6 + $0xa8] sm:$0xff]   ;;  %v1710_v5 = vld [vmem:[%s2451_s6 + $0xb8] sm:$0xff]   ;;  %v1711_v14 = vld [vmem:[%s2451_s6 + $0xc0] sm:$0xff]  }
  0x44   :  { %1603 = vmatpush3.bf16.msra.mxu0 %v1681_v53  ;;  %v1732_v52 = vld [vmem:[%s2452_s1 + $0x6c] ss:$16 sps:$4 sm:$0xff]   ;;  %v1735_v53 = vld [vmem:[%s2452_s1 + $0x68] ss:$16 sps:$4 sm:$0xff]  }
  0x45   :  { %v251_v7 = vpack.c.bf16 %v229_v6, %v182_v4  ;;  %1604 = vmatprep.subr.bf16.mxu0 %v1772_v3  ;;  %v1717_v4 = vld [vmem:[%s2452_s1 + $0x8] ss:$16 sps:$4 sm:$0xff]   ;;  %v1720_v6 = vld [vmem:[%s2452_s1 + $0x2c] ss:$16 sps:$4 sm:$0xff]  }
  0x47   :  { %537 = vmatmul.mubr.bf16.vlgmr.msra.gmra.mrb[0].mxu1 %v251_v7  ;;  %v1723_v7 = vld [vmem:[%s2452_s1 + $0x28] ss:$16 sps:$4 sm:$0xff]  }
  0x48   :  { %1534 = vmatpush3.bf16.msra.mxu1 %v1685_v15  ;;  %1605 = vmatpush3.bf16.msra.mxu0 %v1682_v59  ;;  %v1736_v59 = vld [vmem:[%s2452_s1 + $0x8c] ss:$16 sps:$4 sm:$0xff]   ;;  %v1739_v15 = vld [vmem:[%s2454_s8] sm:$0xff]  }
  0x49   :  { %1535 = vmatprep.subr.bf16.mxu1 %v1686_v20  ;;  %1606 = vmatprep.subr.bf16.mxu0 %v1772_v3  ;;  %v1740_v20 = vld [vmem:[%s2454_s8 + $0x8] sm:$0xff]  }
  0x4a   :  { %1029 = vmatprep.mubr.bf16.mxu1 %v1709_v44 }
  0x4c   :  { %1607 = vmatpush3.bf16.msra.mxu0 %v1684_v21  ;;  %1536 = vmatpush3.bf16.msra.mxu1 %v1687_v17  ;;  %v1741_v21 = vld [vmem:[%s2454_s8 + $0x10] sm:$0xff]   ;;  %v1742_v17 = vld [vmem:[%s2454_s8 + $0x18] sm:$0xff]  }
  0x4d   :  { %1070 = vmatprep.subr.bf16.mxu0 %v1771_v0  ;;  %1537 = vmatprep.subr.bf16.mxu1 %v1689_v19  ;;  %v1743_v19 = vld [vmem:[%s2454_s8 + $0x20] sm:$0xff]  }
  0x50   :  { %1538 = vmatpush3.bf16.msra.mxu1 %v1690_v16 }
  0x51   :  { %1539 = vmatprep.subr.bf16.mxu1 %v1692_v18 }
  0x54   :  { %1540 = vmatpush3.bf16.msra.mxu1 %v1693_v24 }
  0x55   :  { %1541 = vmatprep.subr.bf16.mxu1 %v1695_v26 }
  0x58   :  { %1542 = vmatpush3.bf16.msra.mxu1 %v1696_v22 }
  0x59   :  { %1543 = vmatprep.subr.bf16.mxu1 %v1698_v23 }
  0x5c   :  { %1544 = vmatpush3.bf16.msra.mxu1 %v1699_v32 }
  0x5d   :  { %1545 = vmatprep.subr.bf16.mxu1 %v1701_v33 }
  0x60   :  { %1546 = vmatpush3.bf16.msra.mxu1 %v1702_v25 }
  0x61   :  { %1547 = vmatprep.subr.bf16.mxu1 %v1704_v36 }
  0x64   :  { %1548 = vmatpush3.bf16.msra.mxu1 %v1705_v34 }
  0x65   :  { %1612 = vmatprep.subr.bf16.mxu1 %v1772_v3 }
  0x67   :  { %1030 = vmatmul.mubr.bf16.vlgmr.msra.gmra.mrb[4].mxu1 %v1707_v35  ;;  %v1744_v35 = vld [vmem:[%s2454_s8 + $0x28] sm:$0xff]  }
  0x68   :  { %1037 = vmatprep.mubr.bf16.mxu1 %v1712_v31  ;;  %1613 = vmatpush3.bf16.msra.mxu1 %v1739_v15 }
  0x69   :  { %1614 = vmatprep.subr.bf16.mxu1 %v1772_v3 }
  0x6c   :  { %1615 = vmatpush3.bf16.msra.mxu1 %v1740_v20 }
  0x6d   :  { %1616 = vmatprep.subr.bf16.mxu1 %v1772_v3 }
  0x6f   :  { %1038 = vmatmul.mubr.bf16.gmra.mrb[8].mxu1 %v1716_v45  ;;  %v1745_v45 = vld [vmem:[%s2454_s8 + $0x30] sm:$0xff]  }
  0x70   :  { %1045 = vmatprep.mubr.bf16.mxu1 %v1718_v37  ;;  %1617 = vmatpush3.bf16.msra.mxu1 %v1741_v21 }
  0x71   :  { %1618 = vmatprep.subr.bf16.mxu1 %v1772_v3 }
  0x74   :  { %1619 = vmatpush3.bf16.msra.mxu1 %v1742_v17 }
  0x75   :  { %1620 = vmatprep.subr.bf16.mxu1 %v1772_v3 }
  0x77   :  { %1046 = vmatmul.mubr.bf16.gmra.mrb[12].mxu1 %v1722_v46 }
  0x78   :  { %1053 = vmatprep.mubr.bf16.mxu1 %v1724_v28  ;;  %1621 = vmatpush3.bf16.msra.mxu1 %v1743_v19 }
  0x79   :  { %1622 = vmatprep.subr.bf16.mxu1 %v1772_v3 }
  0x7c   :  { %1623 = vmatpush3.bf16.msra.mxu1 %v1744_v35 }
  0x7d   :  { %1624 = vmatprep.subr.bf16.mxu1 %v1772_v3 }
  0x7f   :  { %1054 = vmatmul.mubr.bf16.gmra.mrb[16].mxu1 %v1728_v27 }
  0x80   :  { %1061 = vmatprep.mubr.bf16.mxu1 %v1730_v29  ;;  %1625 = vmatpush3.bf16.msra.mxu1 %v1745_v45  ;;  %v1746_v29 = vld [vmem:[%s2454_s8 + $0x38] sm:$0xff]  }
  0x81   :  { %1626 = vmatprep.subr.bf16.mxu1 %v1772_v3 }
  0x84   :  { %1627 = vmatpush3.bf16.msra.mxu1 %v1746_v29 }
  0x87   :  { %1062 = vmatmul.mubr.bf16.gmra.mrb[20].mxu1 %v1734_v30 }
  0x88   :  { %1628 = vmatprep.mubr.msk.bf16.mxu1 %vm1773_vm1, %v1772_v3 }
 0x102   :  { %v1518_v49 = vpop.f32.mrb[0].mxu0 }
 0x103   :  { %v1519_v38 = vpop.f32.mrb[1].mxu0 }
 0x104   :  { %v1520_v51 = vadd.f32 %v1519_v38, %v1518_v49  ;;  %v1521_v41 = vpop.f32.mrb[2].mxu0 }
 0x105   :  { %v1522_v43 = vpop.f32.mrb[3].mxu0 }
 0x106   :  { %v1523_v42 = vadd.f32 %v1522_v43, %v1521_v41  ;;  %v498_v54 = vadd.f32 %v1520_v51, %v1406_v50 }
 0x108   :  { %v501_v48 = vadd.f32 %v1523_v42, %v1406_v50 }
 0x11a   :  { %v538_v55 = vpop.f32.mrb[0].mxu1 }
 0x11b   :  { %v539_v57 = vadd.f32 %v538_v55, %v498_v54  ;;  %v540_v11 = vpop.f32.mrb[1].mxu1 }
 0x11c   :  { %v541_v56 = vpop.f32.mrb[2].mxu1 }
 0x11d   :  { %v542_v58 = vadd.f32 %v541_v56, %v501_v48  ;;  %v543_v61 = vpop.f32.mrb[3].mxu1  ;;  %1747 = vtanh.f32 %v539_v57 }
 0x11f   :  { %1749 = vtanh.f32 %v542_v58 }
 0x127   :  { %v1748_v8 = vpop.eup %1747 }
 0x129   :  { %v1750_v62 = vpop.eup %1749 }
 0x12a   :  { %v547_v63 = vpack.c.bf16 %v1750_v62, %v1748_v8  ;;  %v1442_v62 = vld [vmem:[%s2455_s7] ss:$0 sm:$0xff] }
 0x12c   :  { %1609 = vmatmul.mubr.bf16.vlgmr.msra.gmra.mrb[4].mxu0 %v547_v63 }
 0x12d   :  { %1071 = vmatpush1.bf16.msra.mxu0 %v1688_v9  ;;  %1488 = vmatprep.mubr.msk.bf16.mxu0 %vm183_vm0, %v1714_v10 }
 0x12e   :  { %1072 = vmatprep.subr.bf16.mxu0 %v1771_v0 }
 0x131   :  { %1073 = vmatpush1.bf16.msra.mxu0 %v1691_v47 }
 0x132   :  { %1074 = vmatprep.subr.bf16.mxu0 %v1771_v0 }
 0x135   :  { %1075 = vmatpush1.bf16.msra.mxu0 %v1694_v13 }
 0x136   :  { %1076 = vmatprep.subr.bf16.mxu0 %v1771_v0 }
 0x139   :  { %1077 = vmatpush1.bf16.msra.mxu0 %v1697_v60 }
 0x13a   :  { %1078 = vmatprep.subr.bf16.mxu0 %v1771_v0  ;;  %v1549_v16 = vpop.f32.mrb[4].mxu1 }
 0x13b   :  { %v1550_v18 = vpop.f32.mrb[5].mxu1 }
 0x13c   :  { %v1551_v24 = vadd.f32 %v1550_v18, %v1549_v16  ;;  %v1552_v26 = vpop.f32.mrb[6].mxu1 }
 0x13d   :  { %1079 = vmatpush1.bf16.msra.mxu0 %v1700_v1  ;;  %v1553_v22 = vpop.f32.mrb[7].mxu1 }
 0x13e   :  { %1080 = vmatprep.subr.bf16.mxu0 %v1771_v0  ;;  %v1554_v23 = vadd.f32 %v1553_v22, %v1552_v26  ;;  %v1032_v9 = vadd.f32 %v1551_v24, %v1442_v62 }
 0x140   :  { %v1035_v13 = vadd.f32 %v1554_v23, %v1442_v62 }
 0x141   :  { %1081 = vmatpush1.bf16.msra.mxu0 %v1703_v40 }
 0x142   :  { %1082 = vmatprep.subr.bf16.mxu0 %v1771_v0  ;;  %v1555_v32 = vpop.f32.mrb[8].mxu1 }
 0x143   :  { %v1556_v33 = vpop.f32.mrb[9].mxu1 }
 0x144   :  { %v1557_v25 = vadd.f32 %v1556_v33, %v1555_v32  ;;  %v1558_v36 = vpop.f32.mrb[10].mxu1 }
 0x145   :  { %1083 = vmatpush1.bf16.msra.mxu0 %v1706_v2  ;;  %v1559_v34 = vpop.f32.mrb[11].mxu1 }
 0x146   :  { %1084 = vmatprep.subr.bf16.mxu0 %v1771_v0  ;;  %v1560_v44 = vadd.f32 %v1559_v34, %v1558_v36  ;;  %v1040_v2 = vadd.f32 %v1557_v25, %v1442_v62 }
 0x149   :  { %1085 = vmatpush1.bf16.msra.mxu0 %v1710_v5 }
 0x14a   :  { %1086 = vmatprep.subr.bf16.mxu0 %v1771_v0  ;;  %v1726_v0 = vld [vmem:[%s2452_s1 + $0x4c] ss:$16 sps:$4 sm:$0xff]   ;;  %v1561_v31 = vpop.f32.mrb[12].mxu1 }
 0x14b   :  { %v1562_v37 = vpop.f32.mrb[13].mxu1 }
 0x14c   :  { %v1563_v46 = vadd.f32 %v1562_v37, %v1561_v31  ;;  %v1564_v28 = vpop.f32.mrb[14].mxu1 }
 0x14d   :  { %1087 = vmatpush1.bf16.msra.mxu0 %v1711_v14  ;;  %v1565_v27 = vpop.f32.mrb[15].mxu1 }
 0x14e   :  { %v1566_v30 = vadd.f32 %v1565_v27, %v1564_v28 }
 0x150   :  { %1103 = vmatmul.mubr.bf16.vlgmr.msra.gmra.mrb[8].mxu0 %v1717_v4  ;;  %v1051_v17 = vadd.f32 %v1566_v30, %v1442_v62 }
 0x151   :  { %1489 = vmatprep.mubr.msk.bf16.mxu0 %vm183_vm0, %v1720_v6  ;;  %v1043_v6 = vadd.f32 %v1560_v44, %v1442_v62 }
 0x152   :  { %v1567_v49 = vpop.f32.mrb[16].mxu1 }
 0x153   :  { %v1568_v38 = vpop.f32.mrb[17].mxu1 }
 0x154   :  { %v1569_v51 = vadd.f32 %v1568_v38, %v1567_v49  ;;  %v1570_v41 = vpop.f32.mrb[18].mxu1 }
 0x155   :  { %v1571_v43 = vpop.f32.mrb[19].mxu1 }
 0x156   :  { %v1572_v42 = vadd.f32 %v1571_v43, %v1570_v41  ;;  %v1056_v24 = vadd.f32 %v1569_v51, %v1442_v62 }
 0x158   :  { %1111 = vmatmul.mubr.bf16.gmra.mrb[12].mxu0 %v1723_v7  ;;  %v1059_v36 = vadd.f32 %v1572_v42, %v1442_v62 }
 0x159   :  { %1490 = vmatprep.mubr.msk.bf16.mxu0 %vm183_vm0, %v1726_v0 }
 0x15a   :  { %v1573_v50 = vpop.f32.mrb[20].mxu1 }
 0x15b   :  { %v1574_v54 = vpop.f32.mrb[21].mxu1 }
 0x15c   :  { %v1575_v48 = vadd.f32 %v1574_v54, %v1573_v50  ;;  %v1576_v55 = vpop.f32.mrb[22].mxu1 }
 0x15d   :  { %v1577_v57 = vpop.f32.mrb[23].mxu1 }
 0x15e   :  { %v2414_v11 = vadd.f32 %v1577_v57, %v1576_v55  ;;  %v1064_v31 = vadd.f32 %v1575_v48, %v1442_v62  ;;  %v1433_v55 = vld [vmem:[%s2456_s5] ss:$0 sm:$0xff] }
 0x15f   :  { %v1493_v57 = vld [vmem:[%s2457_s9] ss:$0 sm:$0xff] }
 0x160   :  { %1119 = vmatmul.mubr.bf16.gmra.mrb[16].mxu0 %v1729_v39  ;;  %v1067_v30 = vadd.f32 %v2414_v11, %v1442_v62 }
 0x161   :  { %1491 = vmatprep.mubr.msk.bf16.mxu0 %vm183_vm0, %v1732_v52  ;;  %v1048_v52 = vadd.f32 %v1563_v46, %v1442_v62 }
 0x168   :  { %1127 = vmatmul.mubr.bf16.gmra.mrb[20].mxu0 %v1735_v53 }
 0x169   :  { %1492 = vmatprep.mubr.msk.bf16.mxu0 %vm183_vm0, %v1736_v59 }
 0x170   :  { %1135 = vmatmul.mubr.bf16.gmra.mrb[24].mxu0 %v1738_v12 }
 0x1ff   :  { %v2416_v56 = vpop.f32.mrb[4].mxu0 }
 0x200   :  { %v1610_v58 = vpop.f32.mrb[5].mxu0 }
 0x201   :  { %v2418_v61 = vpop.f32.mrb[6].mxu0  ;;  %v654_v58 = vadd.f32 %v1433_v55, %v2416_v56 }
 0x202   :  { %v1611_v8 = vpop.f32.mrb[7].mxu0 }
 0x223   :  { %v1104_v10 = vpop.f32.mrb[8].mxu0 }
 0x224   :  { %v1105_v63 = vadd.f32 %v1104_v10, %v1032_v9  ;;  %v1106_v47 = vpop.f32.mrb[9].mxu0 }
 0x225   :  { %v1107_v60 = vpop.f32.mrb[10].mxu0 }
 0x226   :  { %v1108_v1 = vadd.f32 %v1107_v60, %v1035_v13  ;;  %v1109_v40 = vpop.f32.mrb[11].mxu0  ;;  %1751 = vtanh.f32 %v1105_v63 }
 0x228   :  { %1753 = vtanh.f32 %v1108_v1 }
 0x22b   :  { %v1112_v5 = vpop.f32.mrb[12].mxu0 }
 0x22c   :  { %v1113_v14 = vadd.f32 %v1112_v5, %v1040_v2  ;;  %v1114_v4 = vpop.f32.mrb[13].mxu0 }
 0x22d   :  { %v1115_v7 = vpop.f32.mrb[14].mxu0 }
 0x22e   :  { %v1116_v0 = vadd.f32 %v1115_v7, %v1043_v6  ;;  %v1117_v39 = vpop.f32.mrb[15].mxu0  ;;  %1755 = vtanh.f32 %v1113_v14 }
 0x230   :  { %1757 = vtanh.f32 %v1116_v0  ;;  %v1752_v53 = vpop.eup %1751 }
 0x232   :  { %v1754_v59 = vpop.eup %1753 }
 0x233   :  { %v1120_v12 = vpop.f32.mrb[16].mxu0  ;;  %v1153_v15 = vpack.c.bf16 %v1754_v59, %v1752_v53 }
 0x234   :  { %v1121_v20 = vadd.f32 %v1120_v12, %v1048_v52  ;;  %v1122_v21 = vpop.f32.mrb[17].mxu0 }
 0x235   :  { %v1123_v19 = vpop.f32.mrb[18].mxu0  ;;  %1629 = vmatmul.mubr.bf16.vlgmr.msra.gmra.mrb[24].mxu1 %v1153_v15 }
 0x236   :  { %v1124_v16 = vadd.f32 %v1123_v19, %v1051_v17  ;;  %v1125_v18 = vpop.f32.mrb[19].mxu0  ;;  %1632 = vmatprep.mubr.msk.bf16.mxu1 %vm1773_vm1, %v1772_v3  ;;  %1759 = vtanh.f32 %v1121_v20 }
 0x238   :  { %1761 = vtanh.f32 %v1124_v16  ;;  %v1756_v26 = vpop.eup %1755 }
 0x23a   :  { %v1758_v22 = vpop.eup %1757 }
 0x23b   :  { %v1128_v23 = vpop.f32.mrb[20].mxu0  ;;  %v1154_v32 = vpack.c.bf16 %v1758_v22, %v1756_v26 }
 0x23c   :  { %v1129_v33 = vadd.f32 %v1128_v23, %v1056_v24  ;;  %v1130_v25 = vpop.f32.mrb[21].mxu0 }
 0x23d   :  { %v1131_v34 = vpop.f32.mrb[22].mxu0  ;;  %1633 = vmatmul.mubr.bf16.gmra.mrb[28].mxu1 %v1154_v32 }
 0x23e   :  { %v1132_v35 = vadd.f32 %v1131_v34, %v1059_v36  ;;  %v1133_v44 = vpop.f32.mrb[23].mxu0  ;;  %1636 = vmatprep.mubr.msk.bf16.mxu1 %vm1773_vm1, %v1772_v3  ;;  %1763 = vtanh.f32 %v1129_v33 }
 0x23f   :  { %v1342_v44 = vlaneseq }
 0x240   :  { %1765 = vtanh.f32 %v1132_v35  ;;  %v1760_v45 = vpop.eup %1759 }
 0x242   :  { %v1762_v37 = vpop.eup %1761 }
 0x243   :  { %v1136_v46 = vpop.f32.mrb[24].mxu0  ;;  %v1155_v28 = vpack.c.bf16 %v1762_v37, %v1760_v45  ;;  %v1343_v45 = vand.u32 127, %v1342_v44 }
 0x244   :  { %v1137_v27 = vadd.f32 %v1136_v46, %v1064_v31  ;;  %v1138_v29 = vpop.f32.mrb[25].mxu0 }
 0x245   :  { %v1139_v49 = vpop.f32.mrb[26].mxu0  ;;  %1637 = vmatmul.mubr.bf16.gmra.mrb[32].mxu1 %v1155_v28  ;;  %v1348_v46 = vadd.s32 4294967288, %v1343_v45 }
 0x246   :  { %v1140_v38 = vadd.f32 %v1139_v49, %v1067_v30  ;;  %v1141_v51 = vpop.f32.mrb[27].mxu0  ;;  %1640 = vmatprep.mubr.msk.bf16.mxu1 %vm1773_vm1, %v1772_v3  ;;  %1767 = vtanh.f32 %v1137_v27  ;;  %v1345_v27 = vshrl.u32 %v1342_v44, 7 }
 0x248   :  { %1769 = vtanh.f32 %v1140_v38  ;;  %v1764_v41 = vpop.eup %1763  ;;  %v1351_v30 = vsub.s32 %v1348_v46, %v1345_v27  ;;  %v1346_v38 = vsub.s32 %v1343_v45, %v1345_v27 }
 0x24a   :  { %v1766_v43 = vpop.eup %1765 }
 0x24b   :  { %v1156_v42 = vpack.c.bf16 %v1766_v43, %v1764_v41 }
 0x24d   :  { %1641 = vmatmul.mubr.bf16.gmra.mrb[36].mxu1 %v1156_v42 }
 0x24e   :  { %1644 = vmatprep.mubr.msk.bf16.mxu1 %vm1773_vm1, %v1772_v3  ;;  %v657_v3 = vadd.f32 %v1433_v55, %v2418_v61 }
 0x250   :  { %v1768_v50 = vpop.eup %1767 }
 0x252   :  { %v1770_v54 = vpop.eup %1769 }
 0x253   :  { %v1157_v48 = vpack.c.bf16 %v1770_v54, %v1768_v50 }
 0x255   :  { %1645 = vmatmul.mubr.bf16.gmra.mrb[40].mxu1 %v1157_v48 }
 0x308   :  { %v1263_v11 = vpop.f32.mrb[24].mxu1 }
 0x309   :  { %v1264_v8 = vadd.f32 %v1493_v57, %v1263_v11  ;;  %v1630_v62 = vpop.f32.mrb[25].mxu1 }
 0x30a   :  { %v1266_v9 = vpop.f32.mrb[26].mxu1 }
 0x30b   :  { %v1267_v10 = vadd.f32 %v1493_v57, %v1266_v9  ;;  %v1631_v63 = vpop.f32.mrb[27].mxu1  ;;  %v1302_v47 = vmul.f32 %v1264_v8, %v654_v58 }
 0x30d   :  { %1312 = vadd.xlane.f32.xlu0 %v1302_v47  ;;  %v1303_v13 = vmul.f32 %v1267_v10, %v657_v3 }
 0x310   :  { %v1271_v60 = vpop.f32.mrb[28].mxu1 }
 0x311   :  { %v1272_v1 = vadd.f32 %v1493_v57, %v1271_v60  ;;  %1314 = vadd.xlane.f32.xlu0 %v1303_v13  ;;  %v1634_v40 = vpop.f32.mrb[29].mxu1 }
 0x312   :  { %v1274_v2 = vpop.f32.mrb[30].mxu1 }
 0x313   :  { %v1275_v5 = vadd.f32 %v1493_v57, %v1274_v2  ;;  %v1635_v14 = vpop.f32.mrb[31].mxu1  ;;  %v1304_v4 = vmul.f32 %v1272_v1, %v654_v58 }
 0x315   :  { %1316 = vadd.xlane.f32.xlu1 %v1304_v4  ;;  %v1305_v56 = vmul.f32 %v1275_v5, %v657_v3 }
 0x318   :  { %v1279_v6 = vpop.f32.mrb[32].mxu1 }
 0x319   :  { %v1280_v7 = vadd.f32 %v1493_v57, %v1279_v6  ;;  %1318 = vadd.xlane.f32.xlu1 %v1305_v56  ;;  %v1638_v0 = vpop.f32.mrb[33].mxu1 }
 0x31a   :  { %v1282_v61 = vpop.f32.mrb[34].mxu1 }
 0x31b   :  { %v1283_v39 = vadd.f32 %v1493_v57, %v1282_v61  ;;  %v1639_v52 = vpop.f32.mrb[35].mxu1  ;;  %v1306_v53 = vmul.f32 %v1280_v7, %v654_v58 }
 0x31d   :  { %1320 = vadd.xlane.f32.xlu0 %v1306_v53  ;;  %v1307_v59 = vmul.f32 %v1283_v39, %v657_v3 }
 0x31f   :  { %1322 = vadd.xlane.f32.xlu1 %v1307_v59 }
 0x320   :  { %v1287_v12 = vpop.f32.mrb[36].mxu1 }
 0x321   :  { %v1288_v15 = vadd.f32 %v1493_v57, %v1287_v12  ;;  %v1642_v20 = vpop.f32.mrb[37].mxu1 }
 0x322   :  { %v1290_v21 = vpop.f32.mrb[38].mxu1 }
 0x323   :  { %v1291_v17 = vadd.f32 %v1493_v57, %v1290_v21  ;;  %v1643_v19 = vpop.f32.mrb[39].mxu1  ;;  %v1308_v16 = vmul.f32 %v1288_v15, %v654_v58 }
 0x325   :  { %1324 = vadd.xlane.f32.xlu0 %v1308_v16  ;;  %v1309_v18 = vmul.f32 %v1291_v17, %v657_v3 }
 0x327   :  { %1326 = vadd.xlane.f32.xlu1 %v1309_v18 }
 0x328   :  { %v1295_v24 = vpop.f32.mrb[40].mxu1 }
 0x329   :  { %v1296_v26 = vadd.f32 %v1493_v57, %v1295_v24  ;;  %v1646_v22 = vpop.f32.mrb[41].mxu1 }
 0x32a   :  { %v1298_v23 = vpop.f32.mrb[42].mxu1 }
 0x32b   :  { %v1299_v32 = vadd.f32 %v1493_v57, %v1298_v23  ;;  %v1647_v33 = vpop.f32.mrb[43].mxu1  ;;  %v1310_v25 = vmul.f32 %v1296_v26, %v654_v58 }
 0x32d   :  { %1328 = vadd.xlane.f32.xlu0 %v1310_v25  ;;  %v1311_v36 = vmul.f32 %v1299_v32, %v657_v3 }
 0x32f   :  { %1330 = vadd.xlane.f32.xlu1 %v1311_v36 }
 0x39a   :  { %v1313_v35 = vpop.xlane.xlu0 %1312 }
 0x39b   :  { %v1347_v55 = vrot.slane %v1313_v35, %v1346_v38 }
 0x39e   :  { %v1315_v37 = vpop.xlane.xlu0 %1314 }
 0x39f   :  { %v1352_v42 = vrot.slane %v1315_v37, %v1351_v30 }
 0x3a1   :  { %v1354_v62 = vsel %vm1353_vm2, %v1352_v42, %v1347_v55 }
 0x3a2   :  { %v1317_v34 = vpop.xlane.xlu1 %1316 }
 0x3a3   :  { %v1358_v50 = vrot.slane %v1317_v34, %v1346_v38 }
 0x3a6   :  { %v1319_v31 = vpop.xlane.xlu1 %1318 }
 0x3a7   :  { %v1362_v51 = vrot.slane %v1319_v31, %v1351_v30 }
 0x3a9   :  { %v1363_v57 = vsel %vm1353_vm2, %v1362_v51, %v1358_v50 }
 0x3aa   :  { %v1321_v29 = vpop.xlane.xlu0 %1320  ;;  %v1392_v10 = vsel %vm1391_vm3, %v1363_v57, %v1354_v62 }
 0x3ab   :  { %v1367_v48 = vrot.slane %v1321_v29, %v1346_v38 }
 0x3ac   :  { %v1323_v28 = vpop.xlane.xlu1 %1322 }
 0x3ad   :  { %v1371_v43 = vrot.slane %v1323_v28, %v1351_v30 }
 0x3af   :  { %v1372_v8 = vsel %vm1353_vm2, %v1371_v43, %v1367_v48 }
 0x3b0   :  { %v1394_v13 = vsel %vm1393_vm4, %v1372_v8, %v1392_v10 }
 0x3b2   :  { %v1325_v41 = vpop.xlane.xlu0 %1324 }
 0x3b3   :  { %v1376_v11 = vrot.slane %v1325_v41, %v1346_v38 }
 0x3b4   :  { %v1327_v49 = vpop.xlane.xlu1 %1326 }
 0x3b5   :  { %v1380_v54 = vrot.slane %v1327_v49, %v1351_v30 }
 0x3b7   :  { %v1381_v9 = vsel %vm1353_vm2, %v1380_v54, %v1376_v11 }
 0x3b8   :  { %v1396_v60 = vsel %vm1395_vm5, %v1381_v9, %v1394_v13 }
 0x3ba   :  { %v1329_v58 = vpop.xlane.xlu0 %1328 }
 0x3bb   :  { %v1385_v63 = vrot.slane %v1329_v58, %v1346_v38 }
 0x3bc   :  { %v1331_v3 = vpop.xlane.xlu1 %1330 }
 0x3bd   :  { %v1389_v47 = vrot.slane %v1331_v3, %v1351_v30 }
 0x3bf   :  { %v1390_v1 = vsel %vm1353_vm2, %v1389_v47, %v1385_v63 }
 0x3c0   :  { %v1398_v40 = vsel %vm1397_vm6, %v1390_v1, %v1396_v60 }
 0x3c1   :  { %1401 = vst.msk [vmem:[%s2458_s10] sm:$0x1f] %vm1400_vm7, %v1398_v40 }

</bundles_post_ra>
